<compile_context>
chip_gen: v6e
topology: v6e:2x2x1
jax: 0.10.0
libtpu: 0.0.40
codegen_flags: <defaults>
</compile_context>

<pallas_src>
import functools

import jax
import jax.numpy as jnp
from jax.experimental import pallas as pl
from jax.experimental.pallas import tpu as pltpu

_DEFAULT_COEF = 0.97
_LANE = 128   # lanes per vreg / halo width
_SUB = 8      # sublanes per vreg


def _round_up(n, m):
    return ((n + m - 1) // m) * m


# ----------------------------------------------------------------------------
# General 2-D path: grid = (batch tiles, time tiles), block = (bb, tile_t).
# ----------------------------------------------------------------------------
def _pe2d_kernel(x_ref, halo_ref, o_ref, *, coef):
    t = pl.program_id(1)                      # time-tile index
    x = x_ref[...]                            # (bb, tile_t)
    # Bulk: previous sample via a lane rotate (XLU).  Lane 0 wraps to the last
    # lane of the same tile; it is overwritten by the narrow fix below.
    o_ref[...] = x - coef * pltpu.roll(x, shift=1, axis=1)
    # Lane-0 fix: reflect pad (x[:, 1]) on the first time tile, otherwise the
    # last sample of the previous tile carried in via the 128-lane halo.
    col_prev = jnp.where(t == 0, x[:, 1:2], halo_ref[:, _LANE - 1:_LANE])
    o_ref[:, 0:1] = x[:, 0:1] - coef * col_prev


def _pre_emphasis_2d(x, coef, target_block_bytes):
    B, T = x.shape
    itemsize = x.dtype.itemsize
    bb = B if B <= 256 else 256                      # batch tile (8-aligned when tiled)
    rows_pad = _round_up(bb, _SUB)                   # sublane-padded rows (VMEM accounting)
    lanes_cover = _round_up(T, _LANE)
    tile_t = max(_LANE, (target_block_bytes // (rows_pad * itemsize)) // _LANE * _LANE)
    tile_t = min(tile_t, lanes_cover)
    if lanes_cover >= 4 * _LANE:                     # keep >= 4 time tiles (v7x: 2 TCs)
        tile_t = min(tile_t, max(_LANE, _round_up(pl.cdiv(T, 4), _LANE)))
    n_b, n_t = pl.cdiv(B, bb), pl.cdiv(T, tile_t)
    halo_blocks = tile_t // _LANE

    # Explicit VMEM budget: double-buffered in/out blocks + halo + margin.
    block_bytes = rows_pad * tile_t * itemsize
    halo_bytes = rows_pad * _LANE * itemsize
    vmem_limit = int(min(max(4 * block_bytes + 2 * halo_bytes + (4 << 20), 32 << 20),
                         56 << 20))

    return pl.pallas_call(
        functools.partial(_pe2d_kernel, coef=coef),
        out_shape=jax.ShapeDtypeStruct((B, T), x.dtype),
        grid=(n_b, n_t),
        in_specs=[
            pl.BlockSpec((bb, tile_t), lambda b, t: (b, t)),
            # Halo: last 128 lanes of the previous time tile (clamped at tile 0,
            # where its value is unused).
            pl.BlockSpec((bb, _LANE),
                         lambda b, t: (b, jnp.maximum(t * halo_blocks - 1, 0))),
        ],
        out_specs=pl.BlockSpec((bb, tile_t), lambda b, t: (b, t)),
        compiler_params=pltpu.CompilerParams(
            dimension_semantics=("parallel", "parallel"),
            vmem_limit_bytes=vmem_limit,
        ),
        cost_estimate=pl.CostEstimate(
            flops=2 * B * T, transcendentals=0,
            bytes_accessed=2 * B * T * itemsize),
    )(x, x)


# ----------------------------------------------------------------------------
# Small-batch path: fold time into sublanes, (B, T) -> (B, T//W, W).
# Blocks are (B, S, W) with S % 8 == 0, W % 128 == 0 -> vregs fully occupied.
# ----------------------------------------------------------------------------
def _pe_fold_kernel(x_ref, halo_ref, o_ref, *, coef):
    i = pl.program_id(0)
    nb, s_blk, w = x_ref.shape
    for b in range(nb):                       # B < 8: short static batch loop
        x = x_ref[b]                          # (S, W)
        # Bulk: previous sample along the lane (time-within-row) axis.  Lane 0
        # wraps within the row and is overwritten by the column fix below.
        o_ref[b] = x - coef * pltpu.roll(x, shift=1, axis=1)
        # Lane-0 column: previous sample is the last lane of the row above
        # (sublane roll); row 0 takes the halo (last element of the previous
        # block) or the reflect value x[1] on the global first block.
        col_prev = pltpu.roll(x, shift=1, axis=0)[:, w - 1:w]          # (S, 1)
        first = jnp.where(i == 0, x[0:1, 1:2],
                          halo_ref[b, _SUB - 1:_SUB, _LANE - 1:_LANE])  # (1, 1)
        row = jax.lax.broadcasted_iota(jnp.int32, (s_blk, 1), 0)
        col_prev = jnp.where(row == 0, first, col_prev)
        o_ref[b, :, 0:1] = x[:, 0:1] - coef * col_prev


def _pre_emphasis_folded(x, coef, w, target_block_bytes):
    B, T = x.shape
    itemsize = x.dtype.itemsize
    r = T // w
    x3 = x.reshape(B, r, w)                          # row-major view: no data movement
    rows_cover = _round_up(r, _SUB)
    s_blk = max(_SUB, (target_block_bytes // (B * w * itemsize)) // _SUB * _SUB)
    s_blk = min(s_blk, rows_cover)
    if rows_cover >= 4 * _SUB:                       # keep >= 4 blocks (v7x: 2 TCs)
        s_blk = min(s_blk, max(_SUB, _round_up(pl.cdiv(r, 4), _SUB)))
    n = pl.cdiv(r, s_blk)
    halo_row_blocks = s_blk // _SUB
    last_lane_block = w // _LANE - 1

    block_bytes = B * s_blk * w * itemsize
    halo_bytes = B * _SUB * _LANE * itemsize
    vmem_limit = int(min(max(4 * block_bytes + 2 * halo_bytes + (4 << 20), 32 << 20),
                         56 << 20))

    y3 = pl.pallas_call(
        functools.partial(_pe_fold_kernel, coef=coef),
        out_shape=jax.ShapeDtypeStruct((B, r, w), x.dtype),
        grid=(n,),
        in_specs=[
            pl.BlockSpec((B, s_blk, w), lambda i: (0, i, 0)),
            # Halo: bottom-right (8, 128) corner of the previous block; only its
            # last element (the sample just before this block) is read.
            pl.BlockSpec((B, _SUB, _LANE),
                         lambda i: (0, jnp.maximum(i * halo_row_blocks - 1, 0),
                                    last_lane_block)),
        ],
        out_specs=pl.BlockSpec((B, s_blk, w), lambda i: (0, i, 0)),
        compiler_params=pltpu.CompilerParams(
            dimension_semantics=("parallel",),
            vmem_limit_bytes=vmem_limit,
        ),
        cost_estimate=pl.CostEstimate(
            flops=2 * B * T, transcendentals=0,
            bytes_accessed=2 * B * T * itemsize),
    )(x3, x3)
    return y3.reshape(B, T)


# ----------------------------------------------------------------------------
# Public wrapper (matches the PyTorch module's forward).
# ----------------------------------------------------------------------------
def pre_emphasis(x, coef=_DEFAULT_COEF, target_block_bytes=4 << 20):
    """y[:, t] = x[:, t] - coef * x[:, t-1], reflect at t=0.  (B,T)/(B,1,T) -> (B,T)."""
    if x.ndim == 3:
        assert x.shape[1] == 1
        x = x[:, 0, :]
    B, T = x.shape
    assert T >= 2, "reflect padding requires T >= 2"
    target_block_bytes = int(min(max(target_block_bytes, 1 << 20), 8 << 20))
    if B < _SUB:
        # Small batch: (B, tile) blocks waste (8-B)/8 of every vreg; fold time
        # into sublanes when T allows an exact factorization.
        for w in (1024, 512, 256, 128):
            if T % w == 0 and T // w >= _SUB:
                return _pre_emphasis_folded(x, coef, w, target_block_bytes)
    return _pre_emphasis_2d(x, coef, target_block_bytes)


def pre_emphasis_ref(x, coef=_DEFAULT_COEF):
    """Pure-JAX reference mirroring the PyTorch forward."""
    if x.ndim == 3:
        x = x[:, 0, :]
    x_pad = jnp.concatenate([x[:, 1:2], x], axis=-1)   # reflect-pad left by 1
    return x_pad[:, 1:] - coef * x_pad[:, :-1]


if __name__ == "__main__":
    k1, k2, k3 = jax.random.split(jax.random.PRNGKey(0), 3)

    # 1) T not a multiple of 128 -> general 2-D path; ragged last time tile is
    #    store-masked (no wrapper pad / output slice), 4 time tiles + halo.
    x1 = jax.random.normal(k1, (2, 1000), dtype=jnp.float32)
    y1 = pre_emphasis(x1)
    jax.block_until_ready(y1)
    r1 = pre_emphasis_ref(x1)
    assert y1.shape == (2, 1000)
    assert jnp.allclose(y1, r1, atol=1e-5, rtol=1e-5), float(jnp.max(jnp.abs(y1 - r1)))

    # 2) Small-B waveform, T % 128 == 0, given as (B, 1, T) like the module ->
    #    sublane-folded path (multi-block grid, halo carry, ragged last rows).
    x2 = jax.random.normal(k2, (2, 25600), dtype=jnp.float32)
    y2 = pre_emphasis(x2[:, None, :])
    jax.block_until_ready(y2)
    r2 = pre_emphasis_ref(x2)
    assert y2.shape == (2, 25600)
    assert jnp.allclose(y2, r2, atol=1e-5, rtol=1e-5), float(jnp.max(jnp.abs(y2 - r2)))

    # 3) Larger batch -> 2-D path with batch on sublanes, 4 parallel time tiles.
    x3 = jax.random.normal(k3, (16, 4096), dtype=jnp.float32)
    y3 = pre_emphasis(x3)
    jax.block_until_ready(y3)
    r3 = pre_emphasis_ref(x3)
    assert jnp.allclose(y3, r3, atol=1e-5, rtol=1e-5), float(jnp.max(jnp.abs(y3 - r3)))

    print("KERNEL_OK")
</pallas_src>

<mosaic_0001>
module attributes {stable_mosaic.version = 11 : i64} {
  func.func @_pe2d_kernel(%arg0: i32, %arg1: i32, %arg2: memref<2x256xf32, #tpu.memory_space<vmem>>, %arg3: memref<2x128xf32, #tpu.memory_space<vmem>>, %arg4: memref<2x256xf32, #tpu.memory_space<vmem>>) attributes {dimension_semantics = [#tpu.dimension_semantics<parallel>, #tpu.dimension_semantics<parallel>], iteration_bounds = array<i64: 1, 4>, scalar_prefetch = 0 : i64, scratch_operands = 0 : i64, tpu.core_type = #tpu.core_type<tc>, window_params = [{transform_indices = @transform_0, window_bounds = array<i64: 2, 256>}, {transform_indices = @transform_1, window_bounds = array<i64: 2, 128>}, {transform_indices = @transform_2, window_bounds = array<i64: 2, 256>}]} {
    %c0 = arith.constant 0 : index
    %c0_0 = arith.constant 0 : index
    %0 = vector.load %arg2[%c0, %c0_0] : memref<2x256xf32, #tpu.memory_space<vmem>>, vector<2x256xf32>
    %c1_i32 = arith.constant 1 : i32
    %1 = tpu.dynamic_rotate %0 by %c1_i32 dim 1 : vector<2x256xf32>, i32 -> vector<2x256xf32>
    %cst = arith.constant 9.700000e-01 : f32
    %2 = vector.broadcast %cst : f32 to vector<2x256xf32>
    %3 = arith.mulf %2, %1 : vector<2x256xf32>
    %4 = arith.subf %0, %3 : vector<2x256xf32>
    %c0_1 = arith.constant 0 : index
    %c0_2 = arith.constant 0 : index
    %5 = vector.load %arg4[%c0_1, %c0_2] : memref<2x256xf32, #tpu.memory_space<vmem>>, vector<2x256xf32>
    tpu.vector_store %arg4[%c0_1, %c0_2], %4 {strides = array<i32>} : memref<2x256xf32, #tpu.memory_space<vmem>>, vector<2x256xf32>,
    %c0_i32 = arith.constant 0 : i32
    %6 = arith.cmpi eq, %arg1, %c0_i32 : i32
    %7 = vector.extract_strided_slice %0 {offsets = [0, 1], sizes = [2, 1], strides = [1, 1]} : vector<2x256xf32> to vector<2x1xf32>
    %c0_3 = arith.constant 0 : index
    %c127 = arith.constant 127 : index
    %8 = vector.load %arg3[%c0_3, %c127] : memref<2x128xf32, #tpu.memory_space<vmem>>, vector<2x1xf32>
    %9 = arith.select %6, %7, %8 : vector<2x1xf32>
    %10 = vector.extract_strided_slice %0 {offsets = [0, 0], sizes = [2, 1], strides = [1, 1]} : vector<2x256xf32> to vector<2x1xf32>
    %cst_4 = arith.constant 9.700000e-01 : f32
    %11 = vector.broadcast %cst_4 : f32 to vector<2x1xf32>
    %12 = arith.mulf %11, %9 : vector<2x1xf32>
    %13 = arith.subf %10, %12 : vector<2x1xf32>
    %c0_5 = arith.constant 0 : index
    %c0_6 = arith.constant 0 : index
    %14 = vector.load %arg4[%c0_5, %c0_6] : memref<2x256xf32, #tpu.memory_space<vmem>>, vector<2x1xf32>
    tpu.vector_store %arg4[%c0_5, %c0_6], %13 {strides = array<i32>} : memref<2x256xf32, #tpu.memory_space<vmem>>, vector<2x1xf32>,
    return
  }
  func.func @transform_0(%arg0: i32, %arg1: i32) -> (i32, i32) {
    %c0_i32 = arith.constant 0 : i32
    return %arg0, %arg1 : i32, i32
  }
  func.func @transform_1(%arg0: i32, %arg1: i32) -> (i32, i32) {
    %c2_i32 = arith.constant 2 : i32
    %0 = arith.muli %arg1, %c2_i32 : i32
    %c1_i32 = arith.constant 1 : i32
    %1 = arith.subi %0, %c1_i32 : i32
    %c0_i32 = arith.constant 0 : i32
    %2 = arith.maxsi %1, %c0_i32 : i32
    %c0_i32_0 = arith.constant 0 : i32
    return %arg0, %2 : i32, i32
  }
  func.func @transform_2(%arg0: i32, %arg1: i32) -> (i32, i32) {
    %c0_i32 = arith.constant 0 : i32
    return %arg0, %arg1 : i32, i32
  }
}

</mosaic_0001>

<bundles_post_ra>
// kernel: tpu_custom_call.1
= control target key start
LH: loop header
LB: loop body
LE: loop exit
PB: predicated region body
PF: predicated region fallthrough
CT: control target
= control target key end

     0   :  { %s954_s0 = inlined_call_operand.hbm [shape: f32[2,1000], index: 0, kind: input, shape index: {}]   ;;  %s955_s1 = inlined_call_operand.hbm [shape: f32[2,1000], index: 1, kind: input, shape index: {}]   ;;  %s956_s2 = inlined_call_operand.hbm [shape: f32[2,1000], index: 2, kind: output, shape index: {}]  }
   0x1   :  { %962 = sst [smem:[#allocation13_spill]] %s954_s0 }
   0x2   :  { %7 = vsyncpa [#allocation3], 0 }
   0x3   :  { %9 = vsyncpa [#allocation3 + $0x1], 0 }
   0x4   :  { %10 = vsyncpa [#allocation6], 0 }
   0x5   :  { %12 = vsyncpa [#allocation6 + $0x1], 0 }
   0x6   :  { %13 = vsyncpa [#allocation4], 0 }
   0x7   :  { %15 = vsyncpa [#allocation4 + $0x1], 0  ;;  %s734_s9 = smov 0   ;;  %s736_s10 = smov 0  }
   0x8   :  { %s738_s11 = smov 0   ;;  %s740_s12 = smov 0  }
   0x9   :  { %s742_s13 = smov 0   ;;  %s744_s14 = smov 0  }
   0xa   :  { %s746_s15 = smov 0   ;;  %s748_s16 = smov 0  }
   0xb   :  { %s750_s17 = smov 0  }
   0xc LB: > { %963 = sst [smem:[#allocation11_spill]] %s706_s16  ;;  %s424_s18 = sadd.s32 4294967295, %s710_s17   ;;  %s710_s17 = sphi %s750_s17, %s21_s17   ;;  %s706_s16 = sphi %s748_s16, %s981_s16   ;;  %s702_s15 = sphi %s746_s15, %s980_s15   ;;  %s698_s14 = sphi %s744_s14, %s987_s14   ;;  %s694_s13 = sphi %s742_s13, %s986_s13   ;;  %s690_s12 = sphi %s740_s12, %s985_s12   ;;  %s686_s11 = sphi %s738_s11, %s984_s11   ;;  %s682_s10 = sphi %s736_s10, %s983_s10   ;;  %s678_s9 = sphi %s734_s9, %s982_s9  }
   0xd   : > { %s425_s19 = sadd.s32 4294967294, %s710_s17   ;;  %s30_s20 = sadd.s32 1, %s706_s16 }
   0xe   : > { %s42_s21 = sadd.s32 1, %s698_s14  ;;  %p31_p0 = scmp.ge.s32.totalorder %s30_s20, 4 }
   0xf   : > { %p49_p1 = scmp.ne.s32.totalorder %s698_s14, %s694_s13  ;;  %p957_p2 = scmp.eq.s32.totalorder %s710_s17, 0 }
  0x10   : > { %p55_p3 = scmp.ne.s32.totalorder %s694_s13, %s690_s12  ;;  %s989_s20 = smov (%p31_p0, %s30_s20), 0 }
  0x11   : > { %964 = sst [smem:[#allocation12_spill]] %s989_s20  ;;  %p792_p4 = por %p957_p2, %p49_p1 }
  0x12   : > { %p796_p5 = scmp.eq.s32.totalorder %s424_s18, 0  ;;  %s38_s24 = ssub.s32 %s706_s16, %s989_s20 }
  0x13   : > { %p117_p6 = scmp.eq.s32.totalorder %s424_s18, 3  ;;  %p40_p7 = scmp.eq.s32.totalorder %s38_s24, 0 }
  0x14   : > { %p804_p8 = por %p796_p5, %p55_p3  ;;  %p123_p10 = scmp.eq.s32.totalorder %s425_s19, 3 }
  0x15   : > { %p808_p9 = por %p117_p6, %p49_p1  ;;  %p958_p12 = scmp.lt.s32.totalorder %s710_s17, 4 }
  0x16   : > { %s813_s27 = scalar_select %p40_p7, %s698_s14, %s42_s21  }
  0x17   : > { %s968_s26 = scalar_select %p808_p9, 1, 0 }
  0x18   : > { %p815_p11 = por %p123_p10, %p55_p3  ;;  %s143_s29 = sand.u32 1, %s698_s14  }
  0x19   : > { %s432_s30 = sshll.u32 %s143_s29, 2  ;;  %s449_s3 = sshll.u32 %s706_s16, 6 }
  0x1a   : > { %s969_s28 = scalar_select %p815_p11, 1, 0 }
  0x1b   : > { %s970_s0 = sld [smem:[#allocation13_spill]]  ;;  %s147_s7 = scalar_lea.vmem [#allocation2], %s432_s30 }
  0x1c   : > { %s157_s8 = sshll.u32 %s147_s7, 4  ;;  %p829_p13 = pnand %p958_p12, %p792_p4  ;;  %s158_s8 = int_to_ptr.vmem [resolvable:$true] %s157_s8 }
  0x1d   : > { %p439_p0 = scmp.ge.s32.totalorder %s710_s17, 1  ;;  %p186_p1 = scmp.lt.s32.totalorder %s710_s17, 5 }
  0x1e   : > { %s144_s19 = scalar_lea.sflag [#allocation3], %s143_s29  ;;  %p548_p3 = pneg %p829_p13 }
  0x1f   : > { %s559_s21 = scalar_lea.vmem %s158_s8, 64  ;;  %s712_s24 = smov [#allocation2]  }
  0x20   : > { %p560_p6 = scmp.ne.s32.totalorder %s158_s8, %s559_s21  ;;  %s564_s30 = sshll.u32 %s712_s24, 4  ;;  %s565_s30 = int_to_ptr.vmem [resolvable:$false] %s564_s30 }
  0x21   : > { %s155_s6 = scalar_lea.hbm %s970_s0, %s449_s3  ;;  %s566_s3 = scalar_lea.vmem %s565_s30, 128 }
  0x22   : > { %p562_p7 = pnand %p560_p6, %p548_p3  ;;  %p567_p2 = scmp.lt.s32.totalorder %s158_s8, %s565_s30 }
  0x23   : > { %p568_p11 = scmp.lt.s32.totalorder %s566_s3, %s559_s21 }
  0x24   : > { %p563_p10 = pneg %p562_p7 }
  0x25   : > { %p569_p4 = por %p568_p11, %p567_p2 }
  0x27   : > { %p570_p12 = pnand %p569_p4, %p563_p10 }
  0x29   : > { %573 = shalt.err (!%p570_p12)
}
  0x2a   : > { %460 = dma.hbm_to_vmem [thread:$0]  (!%p829_p13), %s155_s6, 64, %s158_s8, %s144_s19  }
  0x2b   : > { %p843_p3 = pnand %p439_p0, %p186_p1  ;;  %s426_s29 = sshll.u32 %s706_s16, 1 }
  0x2c   : > { %s428_s4 = sshll.u32 %s989_s20, 1  ;;  %s427_s5 = sadd.s32 4294967295, %s426_s29 }
  0x2d   : > { %s429_s7 = sadd.s32 4294967295, %s428_s4  ;;  %p67_p2 = scmp.gt.s32.totalorder %s427_s5, 0 }
  0x2e   : > { %p71_p11 = scmp.gt.s32.totalorder %s429_s7, 0  ;;  %s78_s18 = sadd.s32 1, %s686_s11 }
  0x2f   : > { %p85_p12 = scmp.ne.s32.totalorder %s686_s11, %s682_s10  ;;  %s991_s5 = smov (!%p67_p2, %s427_s5), 0 }
  0x30   : > { %s993_s7 = smov (!%p71_p11, %s429_s7), 0  ;;  %p973_p13 = scmp.eq.s32.totalorder %s710_s17, 0 }
  0x31   : > { %p91_p0 = scmp.ne.s32.totalorder %s682_s10, %s678_s9  ;;  %s74_s8 = ssub.s32 %s991_s5, %s993_s7 }
  0x32   : > { %p854_p6 = por %p85_p12, %p973_p13  ;;  %s164_s19 = sand.u32 1, %s686_s11  }
  0x33   : > { %p76_p1 = scmp.eq.s32.totalorder %s74_s8, 0  ;;  %p863_p7 = por %p91_p0, %p796_p5 }
  0x34   : > { %s435_s24 = sshll.u32 %s164_s19, 1  ;;  %s438_s3 = sshll.u32 %s991_s5, 5 }
  0x35   : > { %s868_s30 = scalar_select %p76_p1, %s686_s11, %s78_s18  }
  0x36   : > { %s179_s0 = scalar_lea.hbm %s955_s1, %s438_s3  ;;  %s168_s20 = scalar_lea.vmem [#allocation5], %s435_s24 }
  0x37   : > { %s181_s16 = sshll.u32 %s168_s20, 4  ;;  %p976_p10 = scmp.lt.s32.totalorder %s710_s17, 4  ;;  %s182_s16 = int_to_ptr.vmem [resolvable:$true] %s181_s16 }
  0x38   : > { %s165_s23 = scalar_lea.sflag [#allocation6], %s164_s19  ;;  %s587_s7 = scalar_lea.vmem %s182_s16, 32 }
  0x39   : > { %p877_p4 = pnand %p976_p10, %p854_p6  ;;  %p588_p2 = scmp.ne.s32.totalorder %s182_s16, %s587_s7 }
  0x3a   : > { %s713_s5 = smov [#allocation5]  }
  0x3b   : > { %p576_p5 = pneg %p877_p4  ;;  %s592_s18 = sshll.u32 %s713_s5, 4  ;;  %s593_s18 = int_to_ptr.vmem [resolvable:$false] %s592_s18 }
  0x3c   : > { %s594_s8 = scalar_lea.vmem %s593_s18, 64  ;;  %p595_p13 = scmp.lt.s32.totalorder %s182_s16, %s593_s18 }
  0x3d   : > { %p590_p11 = pnand %p588_p2, %p576_p5  ;;  %p596_p0 = scmp.lt.s32.totalorder %s594_s8, %s587_s7 }
  0x3f   : > { %p591_p12 = pneg %p590_p11  ;;  %p597_p1 = por %p596_p0, %p595_p13 }
  0x41   : > { %p598_p9 = pnand %p597_p1, %p591_p12 }
  0x43   : > { %601 = shalt.err (!%p598_p9)
}
  0x44   : > { %463 = dma.hbm_to_vmem [thread:$0]  (!%p877_p4), %s179_s0, 32, %s182_s16, %s165_s23  }
  0x45   : > { %190 = sbr.rel (%p843_p3) target bundleno = 329 (0x149), region = 28  ;;  %s888_s20 = sand.u32 (!%p843_p3), 1, %s694_s13  }
  0x46   : > { %s440_s6 = sshll.u32 (!%p843_p3), %s888_s20, 2  ;;  %s193_s19 = scalar_lea.sflag (!%p843_p3), [#allocation3], %s888_s20 }
  0x47   : > { %s196_s24 = scalar_lea.vmem (!%p843_p3), [#allocation2], %s440_s6 }
  0x4a   : > { %665 = dma.done.wait (%p804_p8), %s193_s19, 64  }
  0x4b   : > { %667 = vsyncadd (%p804_p8), %s193_s19, 4294967232  ;;  %s201_s0 = sand.u32 1, %s682_s10  }
  0x4c   : > { %s441_s16 = sshll.u32 %s201_s0, 1  ;;  %s202_s22 = scalar_lea.sflag [#allocation6], %s201_s0 }
  0x4d   : > { %s205_s3 = scalar_lea.vmem [#allocation5], %s441_s16 }
  0x4e   : > { %669 = dma.done.wait (%p863_p7), %s202_s22, 32  }
  0x4f   : > { %671 = vsyncadd (%p863_p7), %s202_s22, 4294967264  ;;  %v242_v0 = vlaneseq  ;;  %v714_v1 = vmov 1983009808   ;;  %v237_v7 = vld [vmem:[%s196_s24] sm:$0xf]  ;;  %s715_s25 = smov 2  }
  0x50   : > { %v240_v2 = vunpack.c.l.s4 %v714_v1  ;;  %v443_v6 = vld.sshfl [vmem:[%s205_s3] sm:$0x3 pattern:$0x76325410]  ;;  %s716_s29 = smov 1   ;;  %p273_p8 = scmp.eq.s32.totalorder %s702_s15, 0 }
  0x51   : > { %v243_v3 = vshrl.u32 %v242_v0, 7  ;;  %286 = vrot.lane.b32.xlu0 %v443_v6, %s715_s25  ;;  %v254_v11 = vand.u32 127, %v242_v0  ;;  %s717_s21 = smov 127   ;;  %s230_s9 = scalar_lea.vmem [#allocation7], %s440_s6  ;;  %vm296_vm2 = vcmask 1024  }
  0x52   : > { %v241_v4 = vunpack.c.0.s8 %v240_v2  ;;  %s275_s4 = scalar_select %p273_p8, 1, 0 }
  0x53   : > { %vm255_vm1 = vcmp.lt.s32.totalorder %v254_v11, 1  ;;  %s450_s23 = sshll.u32 %s702_s15, 6  ;;  %s315_s7 = sshll.u32 %s230_s9, 4  ;;  %s316_s7 = int_to_ptr.vmem [resolvable:$true] %s315_s7 }
  0x54   : > { %v244_v5 = vsub.s32 %v241_v4, %v243_v3  ;;  %v276_v10 = vstv %s275_s4  ;;  %s313_s8 = scalar_lea.hbm %s956_s2, %s450_s23  ;;  %s299_s19 = scalar_lea.sflag [#allocation4], %s888_s20 }
  0x55   : > { %vm277_vm0 = vcmp.eq.s32.totalorder %v276_v10, 1  ;;  %s602_s24 = scalar_lea.vmem %s316_s7, 64  ;;  %p978_p3 = scmp.ne.s32.totalorder %s968_s26, 0 }
  0x56   : > { %v245_v8 = vrot.slane %v237_v7, %v244_v5  ;;  %p603_p9 = scmp.ne.s32.totalorder %s316_s7, %s602_s24  ;;  %s718_s0 = smov [#allocation7]  }
  0x57   : > { %s606_s6 = sshll.u32 %s718_s0, 4  ;;  %s607_s6 = int_to_ptr.vmem [resolvable:$false] %s606_s6 }
  0x58   : > { %v246_v9 = vcombine.high %v245_v8, %v245_v8  ;;  %249 = vrot.lane.b32.xlu0 %v245_v8, %s716_s29  ;;  %p604_p6 = pnand %p603_p9, %p978_p3  ;;  %s608_s15 = scalar_lea.vmem %s607_s6, 128 }
  0x59   : > { %p609_p10 = scmp.lt.s32.totalorder %s316_s7, %s607_s6  ;;  %p610_p4 = scmp.lt.s32.totalorder %s608_s15, %s602_s24 }
  0x5a   : > { %251 = vrot.lane.b32.xlu1 %v246_v9, %s716_s29  ;;  %p605_p7 = pneg %p604_p6 }
  0x5b   : > { %p611_p5 = por %p610_p4, %p609_p10 }
  0x5d   : > { %p612_p2 = pnand %p611_p5, %p605_p7 }
  0xc3   : > { %v287_v12 = vpop.permute.xlu0 %286 }
  0xc4   : > { %v289_v13 = vsel %vm277_vm0, %v237_v7, %v287_v12 }
  0xc5   : > { %v290_v14 = vmul.f32 0.97, %v289_v13 }
  0xc7   : > { %292 = vrot.lane.b32.xlu1 %v290_v14, %s717_s21 }
  0xca   : > { %v250_v15 = vpop.permute.xlu0 %249 }
  0xcc   : > { %v252_v16 = vpop.permute.xlu1 %251 }
  0xcd   : > { %v256_v17 = vsel %vm255_vm1, %v250_v15, %v252_v16  ;;  %v257_v18 = vsel %vm255_vm1, %v252_v16, %v250_v15 }
  0xce   : > { %v258_v19 = vmul.f32 0.97, %v257_v18  ;;  %v259_v20 = vmul.f32 0.97, %v256_v17 }
  0xd0   : > { %v262_v21 = vcombine.low %v258_v19, %v259_v20 }
  0xd2   : > { %v269_v22 = vrot.slane %v262_v21, %v244_v5 }
  0xd4   : > { %v271_v23 = vsub.f32 %v237_v7, %v269_v22 }
  0xd6   : > { %272 = vst [vmem:[%s230_s9] sm:$0xf] %v271_v23 }
 0x139   : > { %v293_v24 = vpop.permute.xlu1 %292 }
 0x13a   : > { %v295_v25 = vsub.f32 %v237_v7, %v293_v24 }
 0x13c   : > { %297 = vst.msk [vmem:[%s230_s9] sm:$0x3] %vm296_vm2, %v295_v25 }
 0x13d   : > { %615 = shalt.err (!%p612_p2)
}
 0x13e   : > { %s616_s16 = scalar_lea.hbm %s313_s8, 64  ;;  %s620_s3 = scalar_lea.hbm %s956_s2, 256 }
 0x13f   : > { %p617_p11 = scmp.ne.s32.totalorder %s313_s8, %s616_s16  ;;  %p621_p0 = scmp.lt.s32.totalorder %s313_s8, %s956_s2 }
 0x140   : > { %p622_p1 = scmp.lt.s32.totalorder %s620_s3, %s616_s16 }
 0x141   : > { %p618_p12 = pnand %p617_p11, %p978_p3 }
 0x142   : > { %p623_p8 = por %p622_p1, %p621_p0 }
 0x143   : > { %p619_p13 = pneg %p618_p12 }
 0x145   : > { %p624_p9 = pnand %p623_p8, %p619_p13 }
 0x147   : > { %627 = shalt.err (!%p624_p9)
}
 0x148   : > { %455 = dma.vmem_to_hbm [thread:$0]  (%p978_p3), %s316_s7, 64, %s313_s8, %s299_s19  }
 0x149 PF: > { %p469_p6 = scmp.ge.s32.totalorder %s710_s17, 2  ;;  %s327_s4 = sand.u32 1, %s690_s12  }
 0x14a   : > { %p979_p7 = scmp.ne.s32.totalorder %s969_s28, 0  ;;  %s328_s21 = scalar_lea.sflag [#allocation4], %s327_s4 }
 0x14c   : > { %p465_p10 = pnand %p469_p6, %p979_p7 }
 0x14e   : > { %p466_p4 = pneg %p465_p10 }
 0x150   : > { %673 = dma.done.wait (%p466_p4), %s328_s21, 64  }
 0x151   : > { %675 = vsyncadd (%p466_p4), %s328_s21, 4294967232  ;;  %s21_s17 = sadd.s32 1, %s710_s17   ;;  %s980_s15 = sld [smem:[#allocation11_spill]] }
 0x152   : > { %p18_p5 = scmp.ge.s32.totalorder %s21_s17, 6   ;;  %s981_s16 = sld [smem:[#allocation12_spill]] }
 0x153   : > { %s982_s9 = smov %s682_s10  ;;  %s983_s10 = smov %s686_s11 }
 0x154   : > { %s984_s11 = smov %s868_s30  ;;  %s985_s12 = smov %s694_s13 }
 0x155   : > { %s986_s13 = smov %s698_s14  ;;  %s987_s14 = smov %s813_s27 }
 0x156   :  { %20 = sbr.rel (!%p18_p5) target bundleno = 12 (0xc), region = 86 }
 0x15b   :  { %333 = vsyncpa [#allocation3], 1 }
 0x15c   :  { %335 = vsyncpa [#allocation3 + $0x1], 1 }
 0x15d   :  { %336 = vsyncpa [#allocation6], 1 }
 0x15e   :  { %338 = vsyncpa [#allocation6 + $0x1], 1 }
 0x15f   :  { %339 = vsyncpa [#allocation4], 1 }
 0x160   :  { %341 = vsyncpa [#allocation4 + $0x1], 1 }

</bundles_post_ra>
